<compile_context>
chip_gen: v5e
topology: v5e:2x2
jax: 0.10.0
libtpu: 0.0.40
codegen_flags: <defaults>
</compile_context>

<pallas_src>
import jax
import jax.numpy as jnp
from jax.experimental import pallas as pl
from jax.experimental.pallas import tpu as pltpu


def _previous_mixing_kernel(x_ref, seed_ref, mix_ref, out_ref, carry_ref):
    # Grid is (parallel time-chunk p, time-block t).
    # INVARIANT (do not reorder the grid): the time-block axis must stay the
    # innermost "arbitrary" axis and the chunk axis the outer "parallel" one.
    # The VMEM carry below encodes the t-1 dependency within a chunk and is
    # re-seeded at t == 0 of every chunk; Mosaic gives each core its own
    # private scratch when the outer axis is megacore-sharded (v7x).
    t = pl.program_id(1)

    @pl.when(t == 0)
    def _seed():
        carry_ref[...] = seed_ref[0]            # (1, L) seed for this chunk

    x = x_ref[...]                              # (tt, L)
    mix = mix_ref[...]                          # (1, L)
    prev = carry_ref[...]                       # (1, L) last row of prev block

    # x[t-1] within the block: sublane roll on the XLU + O(L) row-0 fix below.
    shifted = pltpu.roll(x, shift=1, axis=0)

    # out = x*mix + shifted*(1-mix)  ==  shifted + (x - shifted)*mix
    out_ref[...] = (shifted + (x - shifted) * mix).astype(out_ref.dtype)

    # Row 0 of the block actually mixes with the carried previous row.
    x0 = x[0:1]
    out_ref[0:1, :] = (prev + (x0 - prev) * mix).astype(out_ref.dtype)

    # Carry the last row of this block into the next time block.  (If the
    # global last block is partial this captures a padded row, which is safe:
    # the carry is never consumed after the last block of a chunk.)
    carry_ref[...] = x[-1:]


def _choose_time_tile(T, L, itemsize, target_bytes):
    """Sublane-aligned time tile keeping one block around target_bytes."""
    limit = max(1, target_bytes // (L * itemsize))
    if T <= limit:
        return T                         # full time extent in one block
    tt = max((limit // 8) * 8, 8)        # multiple of 8 sublanes
    return min(tt, T)


def previous_mixing(x, x_last, mix_factor, *,
                    target_block_bytes=2 * 1024 * 1024,
                    parallel_min_bytes=4 * 1024 * 1024):
    """Pallas implementation of PreviousMixing.forward.

    Args:
      x:          (T, B, D) input.
      x_last:     (B, D) carried state (zeros on the first call).
      mix_factor: (D,) learnable mix parameter.

    Returns:
      (out, new_x_last) with out.shape == x.shape and new_x_last == x[-1].
    """
    T, B, D = x.shape
    BD = B * D
    itemsize = jnp.dtype(x.dtype).itemsize

    # ---- lane-dense flat view, padded to a multiple of 128 lanes ----------
    L = ((BD + 127) // 128) * 128
    pad = L - BD
    x2 = x.reshape(T, BD)
    xlast2 = x_last.astype(x.dtype).reshape(1, BD)
    mix2 = jnp.tile(mix_factor.astype(x.dtype), B).reshape(1, BD)
    if pad:
        x2 = jnp.pad(x2, ((0, 0), (0, pad)))
        xlast2 = jnp.pad(xlast2, ((0, 0), (0, pad)))
        mix2 = jnp.pad(mix2, ((0, 0), (0, pad)))

    # ---- time tiling (cdiv grid; partial last block handled by masking) ---
    tt = _choose_time_tile(T, L, itemsize, target_block_bytes)
    n_blocks = pl.cdiv(T, tt)

    # ---- parallel outer split of the time axis (both TCs on v7x) ----------
    P = 2 if (n_blocks % 2 == 0 and n_blocks >= 2
              and T * BD * itemsize >= parallel_min_bytes) else 1
    bpc = n_blocks // P                          # time blocks per chunk

    seed_rows = [xlast2]                         # chunk 0 seed = carried state
    for p in range(1, P):
        boundary = p * bpc * tt - 1              # last row of previous chunk
        seed_rows.append(x2[boundary:boundary + 1])
    seeds = jnp.concatenate(seed_rows, axis=0).reshape(P, 1, L)

    cost = pl.CostEstimate(
        flops=3 * T * BD,
        transcendentals=0,
        bytes_accessed=2 * T * L * itemsize + (P + 1) * L * itemsize,
    )

    grid_spec = pltpu.PrefetchScalarGridSpec(
        num_scalar_prefetch=0,
        grid=(P, bpc),
        in_specs=[
            # x: read exactly once per element.
            pl.BlockSpec((tt, L), lambda p, t: (p * bpc + t, 0)),
            # per-chunk carry seed (consumed only at t == 0).
            pl.BlockSpec((1, 1, L), lambda p, t: (p, 0, 0)),
            # mix factor, resident constant.
            pl.BlockSpec((1, L), lambda p, t: (0, 0)),
        ],
        out_specs=pl.BlockSpec((tt, L), lambda p, t: (p * bpc + t, 0)),
        scratch_shapes=[pltpu.VMEM((1, L), x.dtype)],
    )

    out2 = pl.pallas_call(
        _previous_mixing_kernel,
        out_shape=jax.ShapeDtypeStruct((T, L), x.dtype),
        grid_spec=grid_spec,
        compiler_params=pltpu.CompilerParams(
            dimension_semantics=("parallel", "arbitrary"),
            vmem_limit_bytes=32 * 1024 * 1024,
        ),
        cost_estimate=cost,
    )(x2, seeds, mix2)

    out = (out2[:, :BD] if pad else out2).reshape(T, B, D)
    new_x_last = x[-1]                           # state update (pure glue)
    return out, new_x_last


def previous_mixing_ref(x, x_last, mix_factor):
    """Pure-JAX reference mirroring the PyTorch forward."""
    x_shift = jnp.roll(x, shift=1, axis=0)
    x_shift = x_shift.at[0].set(x_last.astype(x.dtype))
    mix = mix_factor.astype(x.dtype)
    return x * mix + x_shift * (1.0 - mix), x[-1]


if __name__ == "__main__":
    key = jax.random.PRNGKey(0)
    keys = jax.random.split(key, 8)

    # ---- small shapes matching the module (seq=8, batch=2, hidden=32) -----
    T, B, D = 8, 2, 32
    mix_factor = jax.random.uniform(keys[0], (D,), dtype=jnp.float32)

    # First call: x_last is None in the module -> zeros of shape x.shape[1:].
    x1 = jax.random.normal(keys[1], (T, B, D), dtype=jnp.float32)
    x_last0 = jnp.zeros((B, D), dtype=jnp.float32)
    out1, state1 = previous_mixing(x1, x_last0, mix_factor)
    out1 = jax.block_until_ready(out1)
    ref1, ref_state1 = previous_mixing_ref(x1, x_last0, mix_factor)
    assert jnp.allclose(out1, ref1, atol=1e-5, rtol=1e-5)
    assert jnp.allclose(state1, x1[-1])

    # Second call: carries x1[-1] as state (exercises the stateful path).
    x2 = jax.random.normal(keys[2], (T, B, D), dtype=jnp.float32)
    out2, _ = previous_mixing(x2, state1, mix_factor)
    out2 = jax.block_until_ready(out2)
    ref2, _ = previous_mixing_ref(x2, ref_state1, mix_factor)
    assert jnp.allclose(out2, ref2, atol=1e-5, rtol=1e-5)

    # ---- multi-block grid with a parallel time split: exercises the VMEM
    # carry across blocks and the per-chunk seed path. ----------------------
    T3, B3, D3 = 32, 8, 128
    mix3 = jax.random.uniform(keys[3], (D3,), dtype=jnp.float32)
    x3 = jax.random.normal(keys[4], (T3, B3, D3), dtype=jnp.float32)
    s3 = jax.random.normal(keys[5], (B3, D3), dtype=jnp.float32)
    out3, state3 = previous_mixing(x3, s3, mix3,
                                   target_block_bytes=32 * 1024,
                                   parallel_min_bytes=0)
    out3 = jax.block_until_ready(out3)
    ref3, ref_state3 = previous_mixing_ref(x3, s3, mix3)
    assert jnp.allclose(out3, ref3, atol=1e-5, rtol=1e-5)
    assert jnp.allclose(state3, ref_state3)

    # ---- partial last time block (T not a multiple of the tile) -----------
    T4, B4, D4 = 20, 4, 96
    mix4 = jax.random.uniform(keys[6], (D4,), dtype=jnp.float32)
    x4 = jax.random.normal(keys[7], (T4, B4, D4), dtype=jnp.float32)
    s4 = jnp.zeros((B4, D4), dtype=jnp.float32)
    out4, _ = previous_mixing(x4, s4, mix4, target_block_bytes=16 * 1024)
    out4 = jax.block_until_ready(out4)
    ref4, _ = previous_mixing_ref(x4, s4, mix4)
    assert jnp.allclose(out4, ref4, atol=1e-5, rtol=1e-5)

    print("KERNEL_OK")
</pallas_src>

<mosaic_0001>
module attributes {stable_mosaic.version = 11 : i64} {
  func.func @_previous_mixing_kernel(%arg0: i32, %arg1: i32, %arg2: memref<8x128xf32, #tpu.memory_space<vmem>>, %arg3: memref<1x1x128xf32, #tpu.memory_space<vmem>>, %arg4: memref<1x128xf32, #tpu.memory_space<vmem>>, %arg5: memref<8x128xf32, #tpu.memory_space<vmem>>, %arg6: memref<1x128xf32, #tpu.memory_space<vmem>>) attributes {dimension_semantics = [#tpu.dimension_semantics<parallel>, #tpu.dimension_semantics<arbitrary>], iteration_bounds = array<i64: 1, 1>, scalar_prefetch = 0 : i64, scratch_operands = 1 : i64, tpu.core_type = #tpu.core_type<tc>, window_params = [{transform_indices = @transform_0, window_bounds = array<i64: 8, 128>}, {transform_indices = @transform_1, window_bounds = array<i64: 1, 1, 128>}, {pipeline_mode = #tpu.pipeline_mode<synchronous>, transform_indices = @transform_2, window_bounds = array<i64: 1, 128>}, {transform_indices = @transform_3, window_bounds = array<i64: 8, 128>}]} {
    %c0_i32 = arith.constant 0 : i32
    %0 = arith.cmpi eq, %arg1, %c0_i32 : i32
    %1 = arith.extui %0 : i1 to i32
    %c0_i32_0 = arith.constant 0 : i32
    %2 = arith.cmpi ne, %1, %c0_i32_0 : i32
    scf.if %2 {
      %c0_12 = arith.constant 0 : index
      %c0_13 = arith.constant 0 : index
      %c0_14 = arith.constant 0 : index
      %19 = vector.load %arg3[%c0_12, %c0_13, %c0_14] : memref<1x1x128xf32, #tpu.memory_space<vmem>>, vector<1x1x128xf32>
      %20 = vector.shape_cast %19 : vector<1x1x128xf32> to vector<1x128xf32>
      %c0_15 = arith.constant 0 : index
      %c0_16 = arith.constant 0 : index
      %21 = vector.load %arg6[%c0_15, %c0_16] : memref<1x128xf32, #tpu.memory_space<vmem>>, vector<1x128xf32>
      tpu.vector_store %arg6[%c0_15, %c0_16], %20 {strides = array<i32>} : memref<1x128xf32, #tpu.memory_space<vmem>>, vector<1x128xf32>,
    } else {
    }
    %c0 = arith.constant 0 : index
    %c0_1 = arith.constant 0 : index
    %3 = vector.load %arg2[%c0, %c0_1] : memref<8x128xf32, #tpu.memory_space<vmem>>, vector<8x128xf32>
    %c0_2 = arith.constant 0 : index
    %c0_3 = arith.constant 0 : index
    %4 = vector.load %arg4[%c0_2, %c0_3] : memref<1x128xf32, #tpu.memory_space<vmem>>, vector<1x128xf32>
    %c0_4 = arith.constant 0 : index
    %c0_5 = arith.constant 0 : index
    %5 = vector.load %arg6[%c0_4, %c0_5] : memref<1x128xf32, #tpu.memory_space<vmem>>, vector<1x128xf32>
    %c1_i32 = arith.constant 1 : i32
    %6 = tpu.dynamic_rotate %3 by %c1_i32 dim 0 : vector<8x128xf32>, i32 -> vector<8x128xf32>
    %7 = arith.subf %3, %6 : vector<8x128xf32>
    %8 = vector.broadcast %4 : vector<1x128xf32> to vector<8x128xf32>
    %9 = arith.mulf %7, %8 : vector<8x128xf32>
    %10 = arith.addf %6, %9 : vector<8x128xf32>
    %c0_6 = arith.constant 0 : index
    %c0_7 = arith.constant 0 : index
    %11 = vector.load %arg5[%c0_6, %c0_7] : memref<8x128xf32, #tpu.memory_space<vmem>>, vector<8x128xf32>
    tpu.vector_store %arg5[%c0_6, %c0_7], %10 {strides = array<i32>} : memref<8x128xf32, #tpu.memory_space<vmem>>, vector<8x128xf32>,
    %12 = vector.extract_strided_slice %3 {offsets = [0, 0], sizes = [1, 128], strides = [1, 1]} : vector<8x128xf32> to vector<1x128xf32>
    %13 = arith.subf %12, %5 : vector<1x128xf32>
    %14 = arith.mulf %13, %4 : vector<1x128xf32>
    %15 = arith.addf %5, %14 : vector<1x128xf32>
    %c0_8 = arith.constant 0 : index
    %c0_9 = arith.constant 0 : index
    %16 = vector.load %arg5[%c0_8, %c0_9] : memref<8x128xf32, #tpu.memory_space<vmem>>, vector<1x128xf32>
    tpu.vector_store %arg5[%c0_8, %c0_9], %15 {strides = array<i32>} : memref<8x128xf32, #tpu.memory_space<vmem>>, vector<1x128xf32>,
    %17 = vector.extract_strided_slice %3 {offsets = [7, 0], sizes = [1, 128], strides = [1, 1]} : vector<8x128xf32> to vector<1x128xf32>
    %c0_10 = arith.constant 0 : index
    %c0_11 = arith.constant 0 : index
    %18 = vector.load %arg6[%c0_10, %c0_11] : memref<1x128xf32, #tpu.memory_space<vmem>>, vector<1x128xf32>
    tpu.vector_store %arg6[%c0_10, %c0_11], %17 {strides = array<i32>} : memref<1x128xf32, #tpu.memory_space<vmem>>, vector<1x128xf32>,
    return
  }
  func.func @transform_0(%arg0: i32, %arg1: i32) -> (i32, i32) {
    %c1_i32 = arith.constant 1 : i32
    %0 = arith.muli %arg0, %c1_i32 : i32
    %1 = arith.addi %0, %arg1 : i32
    %c0_i32 = arith.constant 0 : i32
    %c0_i32_0 = arith.constant 0 : i32
    return %1, %c0_i32 : i32, i32
  }
  func.func @transform_1(%arg0: i32, %arg1: i32) -> (i32, i32, i32) {
    %c0_i32 = arith.constant 0 : i32
    %c0_i32_0 = arith.constant 0 : i32
    %c0_i32_1 = arith.constant 0 : i32
    return %arg0, %c0_i32, %c0_i32_0 : i32, i32, i32
  }
  func.func @transform_2(%arg0: i32, %arg1: i32) -> (i32, i32) {
    %c0_i32 = arith.constant 0 : i32
    %c0_i32_0 = arith.constant 0 : i32
    %c0_i32_1 = arith.constant 0 : i32
    return %c0_i32, %c0_i32_0 : i32, i32
  }
  func.func @transform_3(%arg0: i32, %arg1: i32) -> (i32, i32) {
    %c1_i32 = arith.constant 1 : i32
    %0 = arith.muli %arg0, %c1_i32 : i32
    %1 = arith.addi %0, %arg1 : i32
    %c0_i32 = arith.constant 0 : i32
    %c0_i32_0 = arith.constant 0 : i32
    return %1, %c0_i32 : i32, i32
  }
}

</mosaic_0001>

<bundles_post_ra>
// kernel: tpu_custom_call.1
= control target key start
LH: loop header
LB: loop body
LE: loop exit
PB: predicated region body
PF: predicated region fallthrough
CT: control target
= control target key end

     0   :  { %8 = vsyncpa [#allocation4], 0  ;;  %s211_s0 = inlined_call_operand.hbm [shape: f32[8,128], index: 0, kind: input, shape index: {}]   ;;  %s212_s1 = inlined_call_operand.hbm [shape: f32[1,1,128], index: 1, kind: input, shape index: {}]   ;;  %s213_s2 = inlined_call_operand.vmem [shape: f32[1,128], index: 2, kind: input, shape index: {}]   ;;  %s214_s3 = inlined_call_operand.hbm [shape: f32[8,128], index: 3, kind: output, shape index: {}]  }
   0x1   :  { %9 = vsyncpa [#allocation7], 0 }
   0x2   :  { %10 = vsyncpa [#allocation5], 0  ;;  %s19_s14 = sshll.u32 %s211_s0, 4  ;;  %s173_s15 = smov [#allocation3]   ;;  %s20_s14 = int_to_ptr.hbm [resolvable:$true] %s19_s14 }
   0x3   :  { %s21_s16 = sshll.u32 %s173_s15, 4  ;;  %s30_s19 = sshll.u32 %s212_s1, 4  ;;  %s22_s16 = int_to_ptr.vmem [resolvable:$true] %s21_s16  ;;  %s31_s19 = int_to_ptr.hbm [resolvable:$true] %s30_s19 }
   0x4   :  { %24 = dma.hbm_to_vmem [thread:$0]  %s20_s14, 128, %s22_s16, [#allocation4]  }
   0x5   :  { %s174_s20 = smov [#allocation6]  }
   0x6   :  { %s32_s21 = sshll.u32 %s174_s20, 4  ;;  %s33_s21 = int_to_ptr.vmem [resolvable:$true] %s32_s21 }
   0x7   :  { %35 = dma.hbm_to_vmem [thread:$0]  %s31_s19, 16, %s33_s21, [#allocation7]  }
   0x8   :  { %167 = dma.done.wait [#allocation4], 128  }
   0x9   :  { %168 = vsyncadd [#allocation4], 4294967168 }
   0xa   :  { %169 = dma.done.wait [#allocation7], 16  }
   0xb   :  { %170 = vsyncadd [#allocation7], 4294967280  ;;  %v52_v0 = vld [vmem:[#allocation6] sm:$0x1]  ;;  %v54_v1 = vld [vmem:[#allocation3] sm:$0xff]  ;;  %s175_s24 = smov [#allocation8]  }
   0xc   :  { %53 = vst [vmem:[#allocation2] sm:$0x1] %v52_v0  ;;  %v57_v2 = vrot.slane %v54_v1, 7  ;;  %v94_v3 = vld [vmem:[%s213_s2] ss:$0 sm:$0xff]  ;;  %s78_s25 = sshll.u32 %s175_s24, 4  ;;  %s79_s25 = int_to_ptr.vmem [resolvable:$true] %s78_s25 }
   0xd   :  { %v55_v7 = vld [vmem:[%s213_s2] sm:$0x1]  ;;  %s80_s28 = sshll.u32 %s214_s3, 4  ;;  %s81_s28 = int_to_ptr.hbm [resolvable:$true] %s80_s28 }
   0xe   :  { %v58_v4 = vsub.f32 %v54_v1, %v57_v2 }
  0x10   :  { %v62_v5 = vmul.f32 %v94_v3, %v58_v4 }
  0x12   :  { %v63_v6 = vadd.f32 %v62_v5, %v57_v2 }
  0x13   :  { %v56_v8 = vld [vmem:[#allocation2] sm:$0x1] }
  0x14   :  { %64 = vst [vmem:[#allocation8] sm:$0xff] %v63_v6  ;;  %v65_v9 = vsub.f32 %v54_v1, %v56_v8 }
  0x15   :  { %69 = vst [vmem:[#allocation2 - $0x7] sm:$0x80] %v54_v1 }
  0x16   :  { %v66_v10 = vmul.f32 %v65_v9, %v55_v7 }
  0x18   :  { %v67_v11 = vadd.f32 %v66_v10, %v56_v8 }
  0x1a   :  { %68 = vst [vmem:[#allocation8] sm:$0x1] %v67_v11 }
  0x1b   :  { %83 = dma.vmem_to_hbm [thread:$0]  %s79_s25, 128, %s81_s28, [#allocation5]  }
  0x1c   :  { %171 = dma.done.wait [#allocation5], 128  }
  0x1d   :  { %172 = vsyncadd [#allocation5], 4294967168 }
  0x1e   :  { %88 = vsyncpa [#allocation4], 1 }
  0x1f   :  { %89 = vsyncpa [#allocation7], 1 }
  0x20   :  { %90 = vsyncpa [#allocation5], 1 }

</bundles_post_ra>
